<compile_context>
chip_gen: v7x
topology: tpu7x:2x2x1
jax: 0.10.0
libtpu: 0.0.40
codegen_flags: <defaults>
</compile_context>

<pallas_src>
import jax
import jax.numpy as jnp
from jax.experimental import pallas as pl
from jax.experimental.pallas import tpu as pltpu

LN_EPS = 1e-5  # PyTorch nn.LayerNorm default


def _round_up(x, m):
    return ((x + m - 1) // m) * m


def seg_head_kernel(x_ref, w_ref, bias_ref, o_ref):
    # x_ref:    (tm, D)     tile of token rows
    # w_ref:    (D, Cpad)   fused head weight  gamma[:, None] * W^T   (bf16/f32)
    # bias_ref: (1, Cpad)   fused head bias    beta @ W^T + b         (f32)
    # o_ref:    (tm, Cpad)  output logits tile
    x = x_ref[...].astype(jnp.float32)

    # --- LayerNorm statistics over the feature axis (affine folded into W/b) ---
    mean = jnp.mean(x, axis=-1, keepdims=True)
    xc = x - mean
    var = jnp.mean(xc * xc, axis=-1, keepdims=True)
    xn = xc * jax.lax.rsqrt(var + LN_EPS)

    # --- Linear head on the MXU: operands in w_ref.dtype, f32 accumulation ---
    out = jnp.dot(xn.astype(w_ref.dtype), w_ref[...],
                  preferred_element_type=jnp.float32)
    out = out + bias_ref[...].astype(jnp.float32)

    o_ref[...] = out.astype(o_ref.dtype)


def segmentation_head(x, gamma, beta, w_t, bias, *,
                      tm=512, matmul_dtype=jnp.bfloat16, x_buffer_count=2):
    """x: (B, N, D).  gamma/beta: (D,).  w_t: (D, C).  bias: (C,).  -> (B, N, C)."""
    B, N, D = x.shape
    C = w_t.shape[1]
    M = B * N
    f32 = jnp.float32

    # ---- Fold the LayerNorm affine into the head (exact algebra, done in f32) ----
    w_fused = gamma.astype(f32)[:, None] * w_t.astype(f32)            # (D, C)
    b_fused = beta.astype(f32) @ w_t.astype(f32) + bias.astype(f32)   # (C,)

    # ---- Lane-dense output: pad classes up to a multiple of 128 ----
    Cpad = _round_up(C, 128)
    if Cpad != C:
        w_fused = jnp.pad(w_fused, ((0, 0), (0, Cpad - C)))
        b_fused = jnp.pad(b_fused, (0, Cpad - C))
    w_fused = w_fused.astype(matmul_dtype)
    b_fused = b_fused.reshape(1, Cpad)

    # ---- Row tiling: big tiles, clamped for tiny inputs; pad M to a multiple ----
    tm_eff = max(8, min(_round_up(tm, 8), _round_up(M, 8)))
    Mpad = _round_up(M, tm_eff)
    x2 = x.reshape(M, D)
    if Mpad != M:
        # Zero rows stay finite through LayerNorm (var=0 -> xn=0) and are sliced off.
        x2 = jnp.pad(x2, ((0, Mpad - M), (0, 0)))

    grid = (Mpad // tm_eff,)

    # ---- Explicit VMEM budget (safe on v7x 64 MiB / v5e 16 MiB scoped default) ----
    xb = x2.dtype.itemsize
    wb = jnp.dtype(matmul_dtype).itemsize
    ob = x.dtype.itemsize
    nbuf = max(2, x_buffer_count)
    used = (nbuf * tm_eff * D * xb          # streamed x tiles
            + 2 * D * Cpad * wb             # (double-buffered) resident weight
            + 2 * Cpad * 4                  # bias
            + 2 * tm_eff * Cpad * ob)       # output double buffer
    vmem_limit = int(min(64 << 20, max(32 << 20, 2 * used + (8 << 20))))

    x_spec_kwargs = {}
    if x_buffer_count != 2:
        # Deeper pipelining of the only streamed operand if DMA is still exposed.
        x_spec_kwargs["pipeline_mode"] = pl.Buffered(x_buffer_count)

    cost = pl.CostEstimate(
        flops=int(2 * Mpad * D * Cpad + 6 * Mpad * D),
        transcendentals=int(Mpad),
        bytes_accessed=int(Mpad * D * xb + Mpad * Cpad * ob + D * Cpad * wb),
    )

    out2 = pl.pallas_call(
        seg_head_kernel,
        out_shape=jax.ShapeDtypeStruct((Mpad, Cpad), x.dtype),
        grid_spec=pltpu.PrefetchScalarGridSpec(
            num_scalar_prefetch=0,
            grid=grid,
            in_specs=[
                pl.BlockSpec((tm_eff, D), lambda i: (i, 0), **x_spec_kwargs),  # x rows
                pl.BlockSpec((D, Cpad), lambda i: (0, 0)),   # fused weight (resident)
                pl.BlockSpec((1, Cpad), lambda i: (0, 0)),   # fused bias   (resident)
            ],
            out_specs=pl.BlockSpec((tm_eff, Cpad), lambda i: (i, 0)),
        ),
        compiler_params=pltpu.CompilerParams(
            dimension_semantics=("parallel",),
            vmem_limit_bytes=vmem_limit,
        ),
        cost_estimate=cost,
    )(x2, w_fused, b_fused)

    return out2[:M, :C].reshape(B, N, C)


def init_params(key, embed_dim, num_classes):
    """Deterministic parameter init mirroring the module's __init__.

    - LayerNorm: weight=1, bias=0 (PyTorch default).
    - head.weight: trunc_normal_(std=0.02) (truncated at +/- 2 std like timm).
    - head.bias:  zeros.
    """
    (k_w,) = jax.random.split(key, 1)
    w = 0.02 * jax.random.truncated_normal(
        k_w, -2.0, 2.0, (num_classes, embed_dim), dtype=jnp.float32)
    gamma = jnp.ones((embed_dim,), jnp.float32)
    beta = jnp.zeros((embed_dim,), jnp.float32)
    bias = jnp.zeros((num_classes,), jnp.float32)
    w_t = jnp.transpose(w)   # PyTorch (C, D) -> (D, C) for x @ W^T
    return gamma, beta, w_t, bias


def reference(x, gamma, beta, w_t, bias):
    """Pure-JAX reference of nn.LayerNorm + nn.Linear."""
    mean = jnp.mean(x, axis=-1, keepdims=True)
    var = jnp.mean((x - mean) ** 2, axis=-1, keepdims=True)
    xn = (x - mean) / jnp.sqrt(var + LN_EPS)
    xn = xn * gamma + beta
    return xn @ w_t + bias


if __name__ == "__main__":
    key = jax.random.PRNGKey(0)
    B, N, D, C = 2, 8, 32, 16   # batch=2, seq=8, embed_dim=32, num_classes=16

    k_x, k_p = jax.random.split(key)
    x = jax.random.normal(k_x, (B, N, D), dtype=jnp.float32)
    gamma, beta, w_t, bias = init_params(k_p, D, C)
    # Non-trivial LayerNorm affine so the weight/bias fold is actually exercised.
    gamma = gamma * 1.1
    beta = beta + 0.05

    ref = reference(x, gamma, beta, w_t, bias)

    # Exact-precision path (f32 MXU operands): matches the PyTorch module tightly.
    out_f32 = jax.block_until_ready(
        segmentation_head(x, gamma, beta, w_t, bias, matmul_dtype=jnp.float32))
    assert out_f32.shape == (B, N, C)
    assert jnp.allclose(out_f32, ref, atol=1e-4, rtol=1e-4), "f32 mismatch vs reference"

    # Default fast path (bf16 MXU operands, f32 accumulation).
    out = jax.block_until_ready(segmentation_head(x, gamma, beta, w_t, bias))
    assert out.shape == (B, N, C)
    assert jnp.allclose(out, ref, atol=1e-2, rtol=1e-2), "bf16 mismatch vs reference"

    # Ragged token count exercises the M-padding / row-tile clamping path.
    x3 = jax.random.normal(k_x, (2, 9, D), dtype=jnp.float32)
    ref3 = reference(x3, gamma, beta, w_t, bias)
    out3 = jax.block_until_ready(
        segmentation_head(x3, gamma, beta, w_t, bias, matmul_dtype=jnp.float32))
    assert out3.shape == (2, 9, C)
    assert jnp.allclose(out3, ref3, atol=1e-4, rtol=1e-4), "padded-M mismatch vs reference"

    print("KERNEL_OK")
</pallas_src>

<mosaic_0001>
module attributes {stable_mosaic.version = 11 : i64} {
  func.func @seg_head_kernel(%arg0: i32, %arg1: memref<16x32xf32, #tpu.memory_space<vmem>>, %arg2: memref<32x128xf32, #tpu.memory_space<vmem>>, %arg3: memref<1x128xf32, #tpu.memory_space<vmem>>, %arg4: memref<16x128xf32, #tpu.memory_space<vmem>>) attributes {dimension_semantics = [#tpu.dimension_semantics<parallel>], iteration_bounds = array<i64: 1>, scalar_prefetch = 0 : i64, scratch_operands = 0 : i64, tpu.core_type = #tpu.core_type<tc>, window_params = [{transform_indices = @transform_0, window_bounds = array<i64: 16, 32>}, {pipeline_mode = #tpu.pipeline_mode<synchronous>, transform_indices = @transform_1, window_bounds = array<i64: 32, 128>}, {pipeline_mode = #tpu.pipeline_mode<synchronous>, transform_indices = @transform_2, window_bounds = array<i64: 1, 128>}, {transform_indices = @transform_3, window_bounds = array<i64: 16, 128>}]} {
    %c0 = arith.constant 0 : index
    %c0_0 = arith.constant 0 : index
    %0 = vector.load %arg1[%c0, %c0_0] : memref<16x32xf32, #tpu.memory_space<vmem>>, vector<16x32xf32>
    %cst = arith.constant dense<0.000000e+00> : vector<16xf32>
    %1 = vector.multi_reduction <add>, %0, %cst [1] : vector<16x32xf32> to vector<16xf32>
    %2 = vector.shape_cast %1 : vector<16xf32> to vector<16x1xf32>
    %cst_1 = arith.constant 3.200000e+01 : f32
    %3 = vector.broadcast %cst_1 : f32 to vector<16x1xf32>
    %4 = arith.divf %2, %3 : vector<16x1xf32>
    %5 = vector.broadcast %4 : vector<16x1xf32> to vector<16x32xf32>
    %6 = arith.subf %0, %5 : vector<16x32xf32>
    %7 = arith.mulf %6, %6 : vector<16x32xf32>
    %cst_2 = arith.constant dense<0.000000e+00> : vector<16xf32>
    %8 = vector.multi_reduction <add>, %7, %cst_2 [1] : vector<16x32xf32> to vector<16xf32>
    %9 = vector.shape_cast %8 : vector<16xf32> to vector<16x1xf32>
    %cst_3 = arith.constant 3.200000e+01 : f32
    %10 = vector.broadcast %cst_3 : f32 to vector<16x1xf32>
    %11 = arith.divf %9, %10 : vector<16x1xf32>
    %cst_4 = arith.constant 9.99999974E-6 : f32
    %12 = vector.broadcast %cst_4 : f32 to vector<16x1xf32>
    %13 = arith.addf %11, %12 : vector<16x1xf32>
    %14 = math.rsqrt %13 : vector<16x1xf32>
    %15 = vector.broadcast %14 : vector<16x1xf32> to vector<16x32xf32>
    %16 = arith.mulf %6, %15 : vector<16x32xf32>
    %c0_5 = arith.constant 0 : index
    %c0_6 = arith.constant 0 : index
    %17 = vector.load %arg2[%c0_5, %c0_6] : memref<32x128xf32, #tpu.memory_space<vmem>>, vector<32x128xf32>
    %cst_7 = arith.constant dense<0.000000e+00> : vector<16x128xf32>
    %18 = tpu.matmul %16, %17, %cst_7 {dimension_numbers = #tpu.dot_dimension_numbers<[1], [0], [0], [1], [0, 0, 1, 1], [], []>} : vector<16x32xf32>, vector<32x128xf32>, vector<16x128xf32> -> vector<16x128xf32>
    %c0_8 = arith.constant 0 : index
    %c0_9 = arith.constant 0 : index
    %19 = vector.load %arg3[%c0_8, %c0_9] : memref<1x128xf32, #tpu.memory_space<vmem>>, vector<1x128xf32>
    %20 = vector.broadcast %19 : vector<1x128xf32> to vector<16x128xf32>
    %21 = arith.addf %18, %20 : vector<16x128xf32>
    %c0_10 = arith.constant 0 : index
    %c0_11 = arith.constant 0 : index
    %22 = vector.load %arg4[%c0_10, %c0_11] : memref<16x128xf32, #tpu.memory_space<vmem>>, vector<16x128xf32>
    tpu.vector_store %arg4[%c0_10, %c0_11], %21 {strides = array<i32>} : memref<16x128xf32, #tpu.memory_space<vmem>>, vector<16x128xf32>,
    return
  }
  func.func @transform_0(%arg0: i32) -> (i32, i32) {
    %c0_i32 = arith.constant 0 : i32
    %c0_i32_0 = arith.constant 0 : i32
    return %arg0, %c0_i32 : i32, i32
  }
  func.func @transform_1(%arg0: i32) -> (i32, i32) {
    %c0_i32 = arith.constant 0 : i32
    %c0_i32_0 = arith.constant 0 : i32
    %c0_i32_1 = arith.constant 0 : i32
    return %c0_i32, %c0_i32_0 : i32, i32
  }
  func.func @transform_2(%arg0: i32) -> (i32, i32) {
    %c0_i32 = arith.constant 0 : i32
    %c0_i32_0 = arith.constant 0 : i32
    %c0_i32_1 = arith.constant 0 : i32
    return %c0_i32, %c0_i32_0 : i32, i32
  }
  func.func @transform_3(%arg0: i32) -> (i32, i32) {
    %c0_i32 = arith.constant 0 : i32
    %c0_i32_0 = arith.constant 0 : i32
    return %arg0, %c0_i32 : i32, i32
  }
}

</mosaic_0001>

<bundles_post_ra>
// kernel: tpu_custom_call.1
= control target key start
LH: loop header
LB: loop body
LE: loop exit
PB: predicated region body
PF: predicated region fallthrough
CT: control target
= control target key end

     0   :  { %8 = vsyncpa [#allocation3], 0  ;;  %s373_s0 = inlined_call_operand.hbm [shape: f32[16,32], index: 0, kind: input, shape index: {}]   ;;  %s374_s1 = inlined_call_operand.hbm [shape: f32[32,128], index: 1, kind: input, shape index: {}]   ;;  %s375_s2 = inlined_call_operand.vmem [shape: f32[1,128], index: 2, kind: input, shape index: {}]   ;;  %s376_s3 = inlined_call_operand.hbm [shape: f32[16,128], index: 3, kind: output, shape index: {}]  }
   0x1   :  { %9 = vsyncpa [#allocation6], 0 }
   0x2   :  { %10 = vsyncpa [#allocation4], 0  ;;  %s294_s12 = smov [#allocation2]   ;;  %s222_s16 = scalar_lea.hbm %s373_s0, 256 }
   0x3   :  { %s16_s13 = sshll.u32 %s294_s12, 4  ;;  %p223_p0 = scmp.ne.s32.totalorder %s373_s0, %s222_s16  ;;  %s17_s13 = int_to_ptr.vmem [resolvable:$true] %s16_s13 }
   0x4   :  { %p226_p1 = scmp.lt.u32.totalorder %s222_s16, %s373_s0 }
   0x6   :  { %p228_p2 = pnand %p226_p1, %p223_p0 }
   0x8   :  { %231 = shalt.err (!%p228_p2)
}
   0x9   :  { %s232_s21 = scalar_lea.vmem %s17_s13, 256  ;;  %p237_p4 = scmp.lt.s32.totalorder %s17_s13, %s17_s13 }
   0xa   :  { %p233_p3 = scmp.ne.s32.totalorder %s17_s13, %s232_s21  ;;  %p238_p5 = scmp.lt.s32.totalorder %s232_s21, %s232_s21 }
   0xc   :  { %p239_p6 = por %p238_p5, %p237_p4 }
   0xe   :  { %p240_p7 = pnand %p239_p6, %p233_p3 }
  0x10   :  { %243 = shalt.err (!%p240_p7)
}
  0x11   :  { %s295_s22 = smov 128   ;;  %s296_s23 = smov 8  }
  0x12   :  { %22 = dma.hbm_to_vmem [thread:$0]  %s373_s0, 256, %s17_s13, [#allocation3], %s295_s22, %s295_s22, %s296_s23  }
  0x13   :  { %s297_s26 = smov [#allocation5]   ;;  %s244_s30 = scalar_lea.hbm %s374_s1, 512 }
  0x14   :  { %s28_s27 = sshll.u32 %s297_s26, 4  ;;  %p245_p8 = scmp.ne.s32.totalorder %s374_s1, %s244_s30  ;;  %s29_s27 = int_to_ptr.vmem [resolvable:$true] %s28_s27 }
  0x15   :  { %p248_p9 = scmp.lt.u32.totalorder %s244_s30, %s374_s1 }
  0x17   :  { %p250_p10 = pnand %p248_p9, %p245_p8 }
  0x19   :  { %253 = shalt.err (!%p250_p10)
}
  0x1a   :  { %s254_s8 = scalar_lea.vmem %s29_s27, 512  ;;  %p259_p12 = scmp.lt.s32.totalorder %s29_s27, %s29_s27 }
  0x1b   :  { %p255_p11 = scmp.ne.s32.totalorder %s29_s27, %s254_s8  ;;  %p260_p13 = scmp.lt.s32.totalorder %s254_s8, %s254_s8 }
  0x1d   :  { %p261_p0 = por %p260_p13, %p259_p12 }
  0x1f   :  { %p262_p1 = pnand %p261_p0, %p255_p11 }
  0x21   :  { %265 = shalt.err (!%p262_p1)
}
  0x22   :  { %34 = dma.hbm_to_vmem [thread:$0]  %s374_s1, 512, %s29_s27, [#allocation6], %s295_s22, %s295_s22, %s296_s23  }
  0x23   :  { %288 = dma.done.wait [#allocation3], 256  }
  0x24   :  { %289 = vsyncadd [#allocation3], 4294967040 }
  0x25   :  { %290 = dma.done.wait [#allocation6], 512  }
  0x26   :  { %291 = vsyncadd [#allocation6], 4294966784  ;;  %vm45_vm0 = vcmask 261120   ;;  %v43_v0 = vld [vmem:[#allocation2] sm:$0xff]  ;;  %v44_v1 = vld [vmem:[#allocation2 + $0x8] sm:$0xff]  ;;  %s298_s11 = smov [#allocation7]  }
  0x27   :  { %v46_v2 = vsel %vm45_vm0, %v43_v0, 0.0  ;;  %v49_v3 = vsel %vm45_vm0, %v44_v1, 0.0  ;;  %v73_v14 = vld [vmem:[#allocation5] sm:$0xff]  ;;  %v74_v15 = vld [vmem:[#allocation5 + $0x8] sm:$0xff]  ;;  %v75_v16 = vld [vmem:[#allocation5 + $0x10] sm:$0xff]  ;;  %s172_s12 = sshll.u32 %s298_s11, 4  ;;  %s173_s12 = int_to_ptr.vmem [resolvable:$true] %s172_s12 }
  0x28   :  { %47 = vadd.xlane.f32.xlu0 %v46_v2  ;;  %v205_v17 = vpack.c.bf16 %v74_v15, %v73_v14  ;;  %v76_v18 = vld [vmem:[#allocation5 + $0x18] sm:$0xff]  ;;  %v185_v30 = vld [vmem:[%s375_s2] ss:$0 sm:$0xff]  ;;  %s266_s13 = scalar_lea.vmem %s173_s12, 256  ;;  %p271_p3 = scmp.lt.s32.totalorder %s173_s12, %s173_s12 }
  0x29   :  { %v209_v19 = vpack.c.bf16 %v76_v18, %v75_v16  ;;  %p267_p2 = scmp.ne.s32.totalorder %s173_s12, %s266_s13  ;;  %p272_p4 = scmp.lt.s32.totalorder %s266_s13, %s266_s13 }
  0x2a   :  { %206 = vmatprep.subr.bf16.mxu0 %v205_v17 }
  0x2b   :  { %208 = vmatpush3.bf16.msra.mxu0 %v205_v17  ;;  %p273_p5 = por %p272_p4, %p271_p3 }
  0x2c   :  { %50 = vadd.xlane.f32.xlu0 %v49_v3  ;;  %210 = vmatprep.subr.bf16.mxu0 %v209_v19 }
  0x2d   :  { %p274_p6 = pnand %p273_p5, %p267_p2 }
  0x2f   :  { %212 = vmatpush3.bf16.msra.mxu0 %v209_v19 }
  0xb5   :  { %v48_v4 = vpop.xlane.xlu0 %47 }
  0xb6   :  { %v53_v5 = vmul.f32 0.03125, %v48_v4 }
  0xb8   :  { %v55_v6 = vsub.f32 %v43_v0, %v53_v5 }
  0xb9   :  { %v51_v7 = vpop.xlane.xlu0 %50 }
  0xba   :  { %v54_v8 = vmul.f32 0.03125, %v51_v7  ;;  %v57_v9 = vmul.f32 %v55_v6, %v55_v6 }
  0xbc   :  { %v56_v10 = vsub.f32 %v44_v1, %v54_v8  ;;  %v59_v11 = vsel %vm45_vm0, %v57_v9, 0.0 }
  0xbd   :  { %60 = vadd.xlane.f32.xlu1 %v59_v11 }
  0xbe   :  { %v58_v12 = vmul.f32 %v56_v10, %v56_v10 }
  0xc0   :  { %v62_v13 = vsel %vm45_vm0, %v58_v12, 0.0 }
  0xc1   :  { %63 = vadd.xlane.f32.xlu1 %v62_v13 }
 0x14a   :  { %v61_v20 = vpop.xlane.xlu1 %60 }
 0x14b   :  { %v65_v21 = vmul.f32 0.03125, %v61_v20 }
 0x14d   :  { %v67_v22 = vadd.f32 1e-05, %v65_v21 }
 0x14e   :  { %v64_v23 = vpop.xlane.xlu1 %63 }
 0x14f   :  { %218 = vrsqrt.f32 %v67_v22  ;;  %v66_v24 = vmul.f32 0.03125, %v64_v23 }
 0x151   :  { %v68_v25 = vadd.f32 1e-05, %v66_v24 }
 0x153   :  { %220 = vrsqrt.f32 %v68_v25 }
 0x159   :  { %v219_v26 = vpop.eup %218 }
 0x15a   :  { %v71_v27 = vmul.f32 %v219_v26, %v55_v6 }
 0x15c   :  { %202 = vmatprep.mubr.msk.f32.mxu0 %vm45_vm0, %v71_v27 }
 0x15d   :  { %v221_v28 = vpop.eup %220 }
 0x15e   :  { %v72_v29 = vmul.f32 %v221_v28, %v56_v10 }
 0x160   :  { %203 = vmatmul.mubr.msk.f32.vlgmr.msra.gmra.mrb[0].mxu0 %vm45_vm0, %v72_v29 }
 0x233   :  { %v204_v31 = vpop.f32.mrb[0].mxu0 }
 0x234   :  { %v162_v32 = vadd.f32 %v204_v31, %v185_v30  ;;  %v156_v33 = vpop.f32.mrb[1].mxu0 }
 0x235   :  { %v157_v34 = vadd.f32 %v185_v30, %v156_v33 }
 0x236   :  { %166 = vst [vmem:[#allocation7 + $0x8] sm:$0xff] %v162_v32 }
 0x237   :  { %165 = vst [vmem:[#allocation7] sm:$0xff] %v157_v34 }
 0x238   :  { %277 = shalt.err (!%p274_p6)
}
 0x239   :  { %s278_s2 = scalar_lea.hbm %s376_s3, 256 }
 0x23a   :  { %p279_p7 = scmp.ne.s32.totalorder %s376_s3, %s278_s2  ;;  %p282_p8 = scmp.lt.u32.totalorder %s278_s2, %s376_s3 }
 0x23c   :  { %p284_p9 = pnand %p282_p8, %p279_p7 }
 0x23e   :  { %287 = shalt.err (!%p284_p9)
}
 0x23f   :  { %178 = dma.vmem_to_hbm [thread:$0]  %s173_s12, 256, %s376_s3, [#allocation4], %s295_s22, %s295_s22, %s296_s23  }
 0x240   :  { %292 = dma.done.wait [#allocation4], 256  }
 0x241   :  { %293 = vsyncadd [#allocation4], 4294967040 }
 0x242   :  { %182 = vsyncpa [#allocation3], 1 }
 0x243   :  { %183 = vsyncpa [#allocation6], 1 }
 0x244   :  { %184 = vsyncpa [#allocation4], 1 }

</bundles_post_ra>
